<compile_context>
chip_gen: v6e
topology: v6e:2x2x1
jax: 0.10.0
libtpu: 0.0.40
codegen_flags: <defaults>
</compile_context>

<pallas_src>
import jax
import jax.numpy as jnp
import numpy as np
from jax.experimental import pallas as pl
from jax.experimental.pallas import tpu as pltpu


def _round_up(x, m):
    return ((x + m - 1) // m) * m


def _adaptive_pool_matrix(t_in, t_out):
    """[t_out, t_in] averaging matrix reproducing torch AdaptiveAvgPool binning."""
    m = np.zeros((t_out, t_in), dtype=np.float32)
    for i in range(t_out):
        start = (i * t_in) // t_out
        end = -((-((i + 1) * t_in)) // t_out)  # ceil((i+1)*t_in / t_out)
        m[i, start:end] = 1.0 / (end - start)
    return m


def _head_kernel(x_ref, w1_ref, b1_ref, w2_ref, b2_ref, o_ref, acc_ref):
    # x_ref  : [tm, tk]   pooled-feature row tile, K slice
    # w1_ref : [tk, Hp]   K slice of the dense 1x1x1 conv weight (streamed)
    # b1_ref : [1,  Hp]
    # w2_ref : [Hp, NCp]  cls 1x1x1 conv weight (small, resident)
    # b2_ref : [1,  NCp]
    # o_ref  : [tm, NCp]
    # acc_ref: [tm, Hp]   f32 accumulator for the first matmul
    k = pl.program_id(1)

    @pl.when(k == 0)
    def _():
        acc_ref[...] = jnp.zeros_like(acc_ref)

    acc_ref[...] += jnp.dot(x_ref[...], w1_ref[...],
                            preferred_element_type=jnp.float32)

    @pl.when(k == pl.num_programs(1) - 1)
    def _():
        h = acc_ref[...] + b1_ref[...]
        # Swish; Dropout(p=0.2) is identity in eval mode.
        h = h * jax.nn.sigmoid(h)
        s = jnp.dot(h, w2_ref[...],
                    preferred_element_type=jnp.float32) + b2_ref[...]
        o_ref[...] = s.astype(o_ref.dtype)


def movinet_head_forward(feature, masks, params, *, clip_seg_num, sample_rate,
                         num_classes, k_tile=512, row_tile_max=256):
    """feature: [N, C_in, T, H, W] (NCDHW, like PyTorch). masks: [N, K, clip_seg_num]."""
    w1, b1, w2, b2 = params
    N, C_in, T, H, W = feature.shape
    hidden = w1.shape[1]
    S = clip_seg_num
    f32 = jnp.float32

    # ---- AdaptiveAvgPool3d((clip_seg_num, 1, 1)), done in the wrapper ----
    # H, W are already the (sublane, lane) minor dims of the NCDHW layout, so
    # the spatial mean is cheap; temporal adaptive binning is a tiny matmul.
    pooled_hw = jnp.mean(feature.astype(f32), axis=(3, 4))               # [N, C, T]
    if T == S:
        pooled = pooled_hw
    else:
        pm = jnp.asarray(_adaptive_pool_matrix(T, S))                    # [S, T]
        pooled = jnp.einsum('nct,st->ncs', pooled_hw, pm)                # [N, C, S]
    x = jnp.transpose(pooled, (0, 2, 1)).reshape(N * S, C_in)            # [N*S, C]

    # ---- Padding: full-width MXU tiles, lane-dense output store ----
    NT = N * S
    Cp0 = _round_up(C_in, 128)
    tk = min(max(128, _round_up(k_tile, 128)), Cp0)   # K tile (multiple of 128)
    Cp = _round_up(C_in, tk)                          # padded K, divisible by tk
    Hp = _round_up(hidden, 128)
    NCp = _round_up(num_classes, 128)
    row_tile = min(row_tile_max, _round_up(NT, 8))
    NT_pad = _round_up(NT, row_tile)

    x_p = jnp.pad(x, ((0, NT_pad - NT), (0, Cp - C_in)))
    w1_p = jnp.pad(w1.astype(f32), ((0, Cp - C_in), (0, Hp - hidden)))
    b1_p = jnp.pad(b1.astype(f32).reshape(1, -1), ((0, 0), (0, Hp - hidden)))
    w2_p = jnp.pad(w2.astype(f32), ((0, Hp - hidden), (0, NCp - num_classes)))
    b2_p = jnp.pad(b2.astype(f32).reshape(1, -1), ((0, 0), (0, NCp - num_classes)))

    grid = (NT_pad // row_tile, Cp // tk)

    out = pl.pallas_call(
        _head_kernel,
        out_shape=jax.ShapeDtypeStruct((NT_pad, NCp), f32),
        grid_spec=pltpu.PrefetchScalarGridSpec(
            num_scalar_prefetch=0,
            grid=grid,
            in_specs=[
                pl.BlockSpec((row_tile, tk), lambda i, k: (i, k)),   # x rows / K slice
                pl.BlockSpec((tk, Hp), lambda i, k: (k, 0)),         # w1 streamed over K
                pl.BlockSpec((1, Hp), lambda i, k: (0, 0)),          # b1 (resident)
                pl.BlockSpec((Hp, NCp), lambda i, k: (0, 0)),        # w2 (resident)
                pl.BlockSpec((1, NCp), lambda i, k: (0, 0)),         # b2 (resident)
            ],
            out_specs=pl.BlockSpec((row_tile, NCp), lambda i, k: (i, 0)),
            scratch_shapes=[pltpu.VMEM((row_tile, Hp), jnp.float32)],
        ),
        compiler_params=pltpu.CompilerParams(
            dimension_semantics=("parallel", "arbitrary")),  # megacore on rows
    )(x_p, w1_p, b1_p, w2_p, b2_p)                                       # [NT_pad, NCp]

    # Strip padding back to the logical result.
    out = out[:NT, :num_classes]                                         # [N*S, nc]

    # Back to the Conv3d output layout [N, num_classes, S] (spatial dims are 1x1).
    score = out.reshape(N, S, num_classes).transpose(0, 2, 1)            # [N, nc, S]

    # torch.reshape([-1, clip_seg_num, num_classes]).permute([0, 2, 1])
    # (raw row-major reinterpret -- reproduced exactly by jnp.reshape)
    score = score.reshape(-1, clip_seg_num, num_classes)
    score = jnp.transpose(score, (0, 2, 1))                              # [N, nc, S]

    # score * masks[:, 0:1, :]
    score = score * masks[:, 0:1, :]

    # unsqueeze(0) + F.interpolate(scale_factor=[1, sample_rate], mode='nearest')
    score = score[None]                                                  # [1, N, nc, S]
    score = jnp.repeat(score, sample_rate, axis=-1)                      # [1, N, nc, S*sr]
    return score


def _reference(feature, masks, params, *, clip_seg_num, sample_rate, num_classes):
    """Pure-JAX reference mirroring the PyTorch forward."""
    w1, b1, w2, b2 = params
    N, C, T, H, W = feature.shape
    pooled_hw = jnp.mean(feature, axis=(3, 4))                           # [N, C, T]
    pm = jnp.asarray(_adaptive_pool_matrix(T, clip_seg_num))             # [S, T]
    pooled = jnp.einsum('nct,st->ncs', pooled_hw, pm)                    # [N, C, S]
    x = pooled.transpose(0, 2, 1)                                        # [N, S, C]
    h = x @ w1 + b1.reshape(1, 1, -1)
    h = h * jax.nn.sigmoid(h)
    s = h @ w2 + b2.reshape(1, 1, -1)                                    # [N, S, nc]
    score = s.transpose(0, 2, 1)                                         # [N, nc, S]
    score = score.reshape(-1, clip_seg_num, num_classes).transpose(0, 2, 1)
    score = score * masks[:, 0:1, :]
    score = score[None]
    return jnp.repeat(score, sample_rate, axis=-1)


if __name__ == "__main__":
    # Small, module-consistent shapes (exercise K-tiling, padding, adaptive T pool).
    N = 2
    in_channels = 320
    hidden_channels = 64
    num_classes = 11
    clip_seg_num = 8
    sample_rate = 4
    T_in = 16            # adaptive-pooled down to clip_seg_num
    H = W = 4

    key = jax.random.PRNGKey(0)
    kf, km, k1, k2, k3, k4 = jax.random.split(key, 6)

    feature = jax.random.normal(kf, (N, in_channels, T_in, H, W), dtype=jnp.float32)
    # masks: [N, K, clip_seg_num]; head uses masks[:, 0:1, :]
    masks = (jax.random.uniform(km, (N, 2, clip_seg_num)) > 0.3).astype(jnp.float32)

    # Deterministic parameter init (1x1x1 conv weights == dense matrices).
    w1 = jax.random.normal(k1, (in_channels, hidden_channels), jnp.float32) * 0.02
    b1 = jax.random.normal(k2, (1, hidden_channels), jnp.float32) * 0.01
    w2 = jax.random.normal(k3, (hidden_channels, num_classes), jnp.float32) * 0.02
    b2 = jax.random.normal(k4, (1, num_classes), jnp.float32) * 0.01
    params = (w1, b1, w2, b2)

    fwd = jax.jit(lambda f, m, p: movinet_head_forward(
        f, m, p, clip_seg_num=clip_seg_num, sample_rate=sample_rate,
        num_classes=num_classes, k_tile=128))

    out = fwd(feature, masks, params)
    out = jax.block_until_ready(out)

    ref = _reference(feature, masks, params,
                     clip_seg_num=clip_seg_num,
                     sample_rate=sample_rate,
                     num_classes=num_classes)

    assert out.shape == (1, N, num_classes, clip_seg_num * sample_rate), out.shape
    np.testing.assert_allclose(np.asarray(out), np.asarray(ref), rtol=1e-5, atol=1e-5)
    print("KERNEL_OK")
</pallas_src>

<mosaic_0001>
module attributes {stable_mosaic.version = 11 : i64} {
  func.func @_head_kernel(%arg0: i32, %arg1: i32, %arg2: memref<16x128xf32, #tpu.memory_space<vmem>>, %arg3: memref<128x128xf32, #tpu.memory_space<vmem>>, %arg4: memref<1x128xf32, #tpu.memory_space<vmem>>, %arg5: memref<128x128xf32, #tpu.memory_space<vmem>>, %arg6: memref<1x128xf32, #tpu.memory_space<vmem>>, %arg7: memref<16x128xf32, #tpu.memory_space<vmem>>, %arg8: memref<16x128xf32, #tpu.memory_space<vmem>>) attributes {dimension_semantics = [#tpu.dimension_semantics<parallel>, #tpu.dimension_semantics<arbitrary>], iteration_bounds = array<i64: 1, 3>, scalar_prefetch = 0 : i64, scratch_operands = 1 : i64, tpu.core_type = #tpu.core_type<tc>, window_params = [{transform_indices = @transform_0, window_bounds = array<i64: 16, 128>}, {transform_indices = @transform_1, window_bounds = array<i64: 128, 128>}, {pipeline_mode = #tpu.pipeline_mode<synchronous>, transform_indices = @transform_2, window_bounds = array<i64: 1, 128>}, {pipeline_mode = #tpu.pipeline_mode<synchronous>, transform_indices = @transform_3, window_bounds = array<i64: 128, 128>}, {pipeline_mode = #tpu.pipeline_mode<synchronous>, transform_indices = @transform_4, window_bounds = array<i64: 1, 128>}, {transform_indices = @transform_5, window_bounds = array<i64: 16, 128>}]} {
    %c0_i32 = arith.constant 0 : i32
    %0 = arith.cmpi eq, %arg1, %c0_i32 : i32
    %1 = arith.extui %0 : i1 to i32
    %c0_i32_0 = arith.constant 0 : i32
    %2 = arith.cmpi ne, %1, %c0_i32_0 : i32
    scf.if %2 {
      %cst_9 = arith.constant 0.000000e+00 : f32
      %12 = vector.broadcast %cst_9 : f32 to vector<16x128xf32>
      %c0_10 = arith.constant 0 : index
      %c0_11 = arith.constant 0 : index
      %13 = vector.load %arg8[%c0_10, %c0_11] : memref<16x128xf32, #tpu.memory_space<vmem>>, vector<16x128xf32>
      tpu.vector_store %arg8[%c0_10, %c0_11], %12 {strides = array<i32>} : memref<16x128xf32, #tpu.memory_space<vmem>>, vector<16x128xf32>,
    } else {
    }
    %c0 = arith.constant 0 : index
    %c0_1 = arith.constant 0 : index
    %3 = vector.load %arg8[%c0, %c0_1] : memref<16x128xf32, #tpu.memory_space<vmem>>, vector<16x128xf32>
    %c0_2 = arith.constant 0 : index
    %c0_3 = arith.constant 0 : index
    %4 = vector.load %arg2[%c0_2, %c0_3] : memref<16x128xf32, #tpu.memory_space<vmem>>, vector<16x128xf32>
    %c0_4 = arith.constant 0 : index
    %c0_5 = arith.constant 0 : index
    %5 = vector.load %arg3[%c0_4, %c0_5] : memref<128x128xf32, #tpu.memory_space<vmem>>, vector<128x128xf32>
    %cst = arith.constant dense<0.000000e+00> : vector<16x128xf32>
    %6 = tpu.matmul %4, %5, %cst {dimension_numbers = #tpu.dot_dimension_numbers<[1], [0], [0], [1], [0, 0, 1, 1], [], []>} : vector<16x128xf32>, vector<128x128xf32>, vector<16x128xf32> -> vector<16x128xf32>
    %7 = arith.addf %3, %6 : vector<16x128xf32>
    %c0_6 = arith.constant 0 : index
    %c0_7 = arith.constant 0 : index
    %8 = vector.load %arg8[%c0_6, %c0_7] : memref<16x128xf32, #tpu.memory_space<vmem>>, vector<16x128xf32>
    tpu.vector_store %arg8[%c0_6, %c0_7], %7 {strides = array<i32>} : memref<16x128xf32, #tpu.memory_space<vmem>>, vector<16x128xf32>,
    %c2_i32 = arith.constant 2 : i32
    %9 = arith.cmpi eq, %arg1, %c2_i32 : i32
    %10 = arith.extui %9 : i1 to i32
    %c0_i32_8 = arith.constant 0 : i32
    %11 = arith.cmpi ne, %10, %c0_i32_8 : i32
    scf.if %11 {
      %c0_9 = arith.constant 0 : index
      %c0_10 = arith.constant 0 : index
      %12 = vector.load %arg8[%c0_9, %c0_10] : memref<16x128xf32, #tpu.memory_space<vmem>>, vector<16x128xf32>
      %c0_11 = arith.constant 0 : index
      %c0_12 = arith.constant 0 : index
      %13 = vector.load %arg4[%c0_11, %c0_12] : memref<1x128xf32, #tpu.memory_space<vmem>>, vector<1x128xf32>
      %14 = vector.broadcast %13 : vector<1x128xf32> to vector<16x128xf32>
      %15 = arith.addf %12, %14 : vector<16x128xf32>
      %16 = arith.negf %15 : vector<16x128xf32>
      %17 = math.exp %16 : vector<16x128xf32>
      %cst_13 = arith.constant 1.000000e+00 : f32
      %18 = vector.broadcast %cst_13 : f32 to vector<16x128xf32>
      %19 = arith.addf %18, %17 : vector<16x128xf32>
      %20 = arith.divf %18, %19 : vector<16x128xf32>
      %21 = arith.mulf %15, %20 : vector<16x128xf32>
      %c0_14 = arith.constant 0 : index
      %c0_15 = arith.constant 0 : index
      %22 = vector.load %arg5[%c0_14, %c0_15] : memref<128x128xf32, #tpu.memory_space<vmem>>, vector<128x128xf32>
      %cst_16 = arith.constant dense<0.000000e+00> : vector<16x128xf32>
      %23 = tpu.matmul %21, %22, %cst_16 {dimension_numbers = #tpu.dot_dimension_numbers<[1], [0], [0], [1], [0, 0, 1, 1], [], []>} : vector<16x128xf32>, vector<128x128xf32>, vector<16x128xf32> -> vector<16x128xf32>
      %c0_17 = arith.constant 0 : index
      %c0_18 = arith.constant 0 : index
      %24 = vector.load %arg6[%c0_17, %c0_18] : memref<1x128xf32, #tpu.memory_space<vmem>>, vector<1x128xf32>
      %25 = vector.broadcast %24 : vector<1x128xf32> to vector<16x128xf32>
      %26 = arith.addf %23, %25 : vector<16x128xf32>
      %c0_19 = arith.constant 0 : index
      %c0_20 = arith.constant 0 : index
      %27 = vector.load %arg7[%c0_19, %c0_20] : memref<16x128xf32, #tpu.memory_space<vmem>>, vector<16x128xf32>
      tpu.vector_store %arg7[%c0_19, %c0_20], %26 {strides = array<i32>} : memref<16x128xf32, #tpu.memory_space<vmem>>, vector<16x128xf32>,
    } else {
    }
    return
  }
  func.func @transform_0(%arg0: i32, %arg1: i32) -> (i32, i32) {
    %c0_i32 = arith.constant 0 : i32
    return %arg0, %arg1 : i32, i32
  }
  func.func @transform_1(%arg0: i32, %arg1: i32) -> (i32, i32) {
    %c0_i32 = arith.constant 0 : i32
    %c0_i32_0 = arith.constant 0 : i32
    return %arg1, %c0_i32 : i32, i32
  }
  func.func @transform_2(%arg0: i32, %arg1: i32) -> (i32, i32) {
    %c0_i32 = arith.constant 0 : i32
    %c0_i32_0 = arith.constant 0 : i32
    %c0_i32_1 = arith.constant 0 : i32
    return %c0_i32, %c0_i32_0 : i32, i32
  }
  func.func @transform_3(%arg0: i32, %arg1: i32) -> (i32, i32) {
    %c0_i32 = arith.constant 0 : i32
    %c0_i32_0 = arith.constant 0 : i32
    %c0_i32_1 = arith.constant 0 : i32
    return %c0_i32, %c0_i32_0 : i32, i32
  }
  func.func @transform_4(%arg0: i32, %arg1: i32) -> (i32, i32) {
    %c0_i32 = arith.constant 0 : i32
    %c0_i32_0 = arith.constant 0 : i32
    %c0_i32_1 = arith.constant 0 : i32
    return %c0_i32, %c0_i32_0 : i32, i32
  }
  func.func @transform_5(%arg0: i32, %arg1: i32) -> (i32, i32) {
    %c0_i32 = arith.constant 0 : i32
    %c0_i32_0 = arith.constant 0 : i32
    return %arg0, %c0_i32 : i32, i32
  }
}

</mosaic_0001>

<bundles_post_ra>
// kernel: _lambda_.1
= control target key start
LH: loop header
LB: loop body
LE: loop exit
PB: predicated region body
PF: predicated region fallthrough
CT: control target
= control target key end

     0   :  { %s866_s18 = smov 0   ;;  %s868_s19 = smov 0   ;;  %s1018_s0 = inlined_call_operand.vmem [shape: f32[16,384], index: 0, kind: input, shape index: {}]   ;;  %s1019_s1 = inlined_call_operand.vmem [shape: f32[384,128], index: 1, kind: input, shape index: {}]   ;;  %s1020_s2 = inlined_call_operand.vmem [shape: f32[1,128], index: 2, kind: input, shape index: {}]   ;;  %s1021_s3 = inlined_call_operand.vmem [shape: f32[128,128], index: 3, kind: input, shape index: {}]   ;;  %s1022_s4 = inlined_call_operand.vmem [shape: f32[1,128], index: 4, kind: input, shape index: {}]   ;;  %s1023_s5 = inlined_call_operand.vmem [shape: f32[16,128], index: 5, kind: output, shape index: {}]  }
   0x1   :  { %s870_s20 = smov 0   ;;  %s872_s21 = smov 0  }
   0x2   :  { %s874_s22 = smov 0  }
   0x3 LB: > { %s24_s23 = sadd.s32 1, %s829_s21  ;;  %p43_p1 = scmp.ne.s32.totalorder %s821_s19, %s817_s18  ;;  %s833_s22 = sphi %s874_s22, %s15_s22   ;;  %s829_s21 = sphi %s872_s21, %s1027_s21   ;;  %s825_s20 = sphi %s870_s20, %s1026_s20   ;;  %s821_s19 = sphi %s868_s19, %s1025_s19   ;;  %s817_s18 = sphi %s866_s18, %s1024_s18  }
   0x4   : > { %p25_p0 = scmp.ge.s32.totalorder %s24_s23, 3  ;;  %p44_p2 = scmp.eq.s32.totalorder %s833_s22, 0 }
   0x5   : > { %s36_s25 = sadd.s32 1, %s821_s19  ;;  %p623_p5 = scmp.ge.s32.totalorder %s833_s22, 3 }
   0x6   : > { %s1029_s23 = smov (%p25_p0, %s24_s23), 0  ;;  %p45_p3 = por %p44_p2, %p43_p1 }
   0x7   : > { %s32_s24 = ssub.s32 %s829_s21, %s1029_s23  ;;  %193 = sbr.rel (%p623_p5) target bundleno = 17 (0x11), region = 28 }
   0x8   : > { %p34_p4 = scmp.eq.s32.totalorder %s32_s24, 0 }
   0xa   : > { %s901_s26 = scalar_select %p34_p4, %s821_s19, %s36_s25  }
   0xc   : > { %196 = sbr.rel (!%p45_p3) target bundleno = 17 (0x11), region = 32  ;;  %s198_s27 = sand.u32 (%p45_p3), 1, %s821_s19  }
   0xd   : > { %s625_s28 = sshll.u32 (%p45_p3), %s829_s21, 3  ;;  %s624_s29 = sshll.u32 (%p45_p3), %s198_s27, 4 }
   0xe   : > { %s205_s7 = scalar_lea.vmem (%p45_p3), %s1018_s0, %s625_s28  ;;  %s200_s8 = scalar_lea.vmem (%p45_p3), [#allocation3], %s624_s29 }
   0xf   : > { %v236_v0 = vld [vmem:[%s205_s7] sm:$0xff] (%p45_p3)  ;;  %v238_v1 = vld [vmem:[%s205_s7 + $0x18] sm:$0xff] (%p45_p3) }
  0x10   : > { %237 = vst [vmem:[%s200_s8] sm:$0xff] (%p45_p3), %v236_v0  ;;  %239 = vst [vmem:[%s200_s8 + $0x8] sm:$0xff] (%p45_p3), %v238_v1 }
  0x11 PF: > { %p626_p6 = scmp.ge.s32.totalorder %s833_s22, 1  ;;  %p253_p7 = scmp.lt.s32.totalorder %s833_s22, 4 }
  0x13   : > { %p254_p8 = pnand %p626_p6, %p253_p7 }
  0x14   : > { %s260_s9 = sand.u32 (!%p254_p8), 1, %s817_s18   ;;  %s628_s10 = sshll.u32 (!%p254_p8), %s825_s20, 4 }
  0x15   : > { %257 = sbr.rel (%p254_p8) target bundleno = 506 (0x1fa), region = 74  ;;  %s913_s11 = sshll.u32 (!%p254_p8), %s260_s9, 4 }
  0x16   : > { %p294_p9 = scmp.lt.s32.totalorder (!%p254_p8), %s628_s10, 47  ;;  %s262_s16 = scalar_lea.vmem (!%p254_p8), [#allocation3], %s913_s11 }
  0x17   : > { %p630_p10 = scmp.ne.s32.totalorder (!%p254_p8), %s825_s20, 0 }
  0x1a   : > { %s1031_s10 = smov (!%p294_p9, %s628_s10), 47  ;;  %308 = sbr.rel (%p630_p10) target bundleno = 33 (0x21), region = 82 }
  0x1b   : > { %s629_s12 = sshll.u32 %s1031_s10, 3 }
  0x1c   : > { %s918_s15 = scalar_lea.vmem %s1019_s1, %s629_s12 }
  0x1f   : > { %v835_v2 = vmov 0.0  }
  0x20   : > { %309 = vst [vmem:[#allocation2] sm:$0xff] %v835_v2  ;;  %310 = vst [vmem:[#allocation2 + $0x8] sm:$0xff] %v835_v2 }
  0x21 PF: > { %v330_v3 = vld [vmem:[%s918_s15 + $0x78] sm:$0xff]  ;;  %v329_v4 = vld [vmem:[%s918_s15 + $0x70] sm:$0xff]  ;;  %v328_v5 = vld [vmem:[%s918_s15 + $0x68] sm:$0xff]  ;;  %p631_p11 = scmp.ne.s32.totalorder %s825_s20, 2 }
  0x22   : > { %676 = vmatprep.subr.mxu0 %v330_v3  ;;  %v327_v6 = vld [vmem:[%s918_s15 + $0x60] sm:$0xff]  ;;  %v326_v8 = vld [vmem:[%s918_s15 + $0x58] sm:$0xff]  ;;  %v325_v9 = vld [vmem:[%s918_s15 + $0x50] sm:$0xff] }
  0x23   : > { %677 = vmatpush3.msra.mxu0 %v330_v3  ;;  %v313_v7 = vld [vmem:[%s262_s16] sm:$0xff]  ;;  %v324_v10 = vld [vmem:[%s918_s15 + $0x48] sm:$0xff]  ;;  %v322_v12 = vld [vmem:[%s918_s15 + $0x38] sm:$0xff] }
  0x24   : > { %678 = vmatprep.subr.mxu0 %v329_v4  ;;  %708 = vmatprep.mubr.f32.mxu0 %v313_v7  ;;  %v323_v11 = vld [vmem:[%s918_s15 + $0x40] sm:$0xff]  ;;  %v321_v13 = vld [vmem:[%s918_s15 + $0x30] sm:$0xff]  ;;  %v320_v14 = vld [vmem:[%s918_s15 + $0x28] sm:$0xff] }
  0x25   : > { %679 = vmatpush3.msra.mxu0 %v329_v4  ;;  %v319_v15 = vld [vmem:[%s918_s15 + $0x20] sm:$0xff]  ;;  %v318_v16 = vld [vmem:[%s918_s15 + $0x18] sm:$0xff]  ;;  %v317_v17 = vld [vmem:[%s918_s15 + $0x10] sm:$0xff] }
  0x26   : > { %680 = vmatprep.subr.mxu0 %v328_v5  ;;  %v316_v18 = vld [vmem:[%s918_s15 + $0x8] sm:$0xff]  ;;  %v315_v19 = vld [vmem:[%s918_s15] sm:$0xff] }
  0x27   : > { %681 = vmatpush3.msra.mxu0 %v328_v5  ;;  %v314_v20 = vld [vmem:[%s262_s16 + $0x8] sm:$0xff]  ;;  %v311_v23 = vld [vmem:[#allocation2] sm:$0xff] }
  0x28   : > { %682 = vmatprep.subr.mxu0 %v327_v6  ;;  %v312_v21 = vld [vmem:[#allocation2 + $0x8] sm:$0xff] }
  0x29   : > { %683 = vmatpush3.msra.mxu0 %v327_v6 }
  0x2a   : > { %684 = vmatprep.subr.mxu0 %v326_v8 }
  0x2b   : > { %685 = vmatpush3.msra.mxu0 %v326_v8 }
  0x2c   : > { %686 = vmatprep.subr.mxu0 %v325_v9 }
  0x2d   : > { %687 = vmatpush3.msra.mxu0 %v325_v9 }
  0x2e   : > { %688 = vmatprep.subr.mxu0 %v324_v10 }
  0x2f   : > { %689 = vmatpush3.msra.mxu0 %v324_v10 }
  0x30   : > { %690 = vmatprep.subr.mxu0 %v323_v11 }
  0x31   : > { %691 = vmatpush3.msra.mxu0 %v323_v11 }
  0x32   : > { %692 = vmatprep.subr.mxu0 %v322_v12 }
  0x33   : > { %693 = vmatpush3.msra.mxu0 %v322_v12 }
  0x34   : > { %694 = vmatprep.subr.mxu0 %v321_v13 }
  0x35   : > { %695 = vmatpush3.msra.mxu0 %v321_v13 }
  0x36   : > { %696 = vmatprep.subr.mxu0 %v320_v14 }
  0x37   : > { %697 = vmatpush3.msra.mxu0 %v320_v14 }
  0x38   : > { %698 = vmatprep.subr.mxu0 %v319_v15 }
  0x39   : > { %699 = vmatpush3.msra.mxu0 %v319_v15 }
  0x3a   : > { %700 = vmatprep.subr.mxu0 %v318_v16 }
  0x3b   : > { %701 = vmatpush3.msra.mxu0 %v318_v16 }
  0x3c   : > { %702 = vmatprep.subr.mxu0 %v317_v17 }
  0x3d   : > { %703 = vmatpush3.msra.mxu0 %v317_v17 }
  0x3e   : > { %704 = vmatprep.subr.mxu0 %v316_v18 }
  0x3f   : > { %705 = vmatpush3.msra.mxu0 %v316_v18 }
  0x40   : > { %706 = vmatprep.subr.mxu0 %v315_v19 }
  0x41   : > { %707 = vmatpush3.msra.mxu0 %v315_v19 }
  0x42   : > { %709 = vmatmul.mubr.f32.vlgmr.msra.gmra.mxu0 %v314_v20 }
 0x102   : > { %v710_v22 = vpop.f32.mrf.mxu0 }
 0x103   : > { %v407_v24 = vadd.f32 %v710_v22, %v312_v21  ;;  %413 = sbr.rel (%p631_p11) target bundleno = 506 (0x1fa), region = 86 }
 0x104   : > { %v397_v25 = vpop.f32.mrf.mxu0 }
 0x105   : > { %409 = vst [vmem:[#allocation2 + $0x8] sm:$0xff] %v407_v24  ;;  %v406_v26 = vadd.f32 %v397_v25, %v311_v23 }
 0x107   : > { %408 = vst [vmem:[#allocation2] sm:$0xff] %v406_v26 }
 0x108   : > { %v454_v27 = vld [vmem:[%s1021_s3 + $0x78] sm:$0xff]  ;;  %v453_v28 = vld [vmem:[%s1021_s3 + $0x70] sm:$0xff]  ;;  %v452_v29 = vld [vmem:[%s1021_s3 + $0x68] sm:$0xff] }
 0x109   : > { %711 = vmatprep.subr.mxu0 %v454_v27  ;;  %v451_v30 = vld [vmem:[%s1021_s3 + $0x60] sm:$0xff]  ;;  %v450_v33 = vld [vmem:[%s1021_s3 + $0x58] sm:$0xff]  ;;  %v449_v37 = vld [vmem:[%s1021_s3 + $0x50] sm:$0xff] }
 0x10a   : > { %712 = vmatpush3.msra.mxu0 %v454_v27  ;;  %v632_v34 = vld [vmem:[%s1020_s2] ss:$0 sm:$0xff]  ;;  %v448_v40 = vld [vmem:[%s1021_s3 + $0x48] sm:$0xff]  ;;  %v446_v42 = vld [vmem:[%s1021_s3 + $0x38] sm:$0xff] }
 0x10b   : > { %713 = vmatprep.subr.mxu0 %v453_v28  ;;  %v447_v41 = vld [vmem:[%s1021_s3 + $0x40] sm:$0xff]  ;;  %v445_v43 = vld [vmem:[%s1021_s3 + $0x30] sm:$0xff]  ;;  %v444_v44 = vld [vmem:[%s1021_s3 + $0x28] sm:$0xff] }
 0x10c   : > { %714 = vmatpush3.msra.mxu0 %v453_v28  ;;  %v415_v32 = vld [vmem:[#allocation2 + $0x8] sm:$0xff]  ;;  %v443_v45 = vld [vmem:[%s1021_s3 + $0x20] sm:$0xff]  ;;  %v442_v46 = vld [vmem:[%s1021_s3 + $0x18] sm:$0xff] }
 0x10d   : > { %715 = vmatprep.subr.mxu0 %v452_v29  ;;  %v424_v36 = vadd.f32 %v632_v34, %v415_v32  ;;  %v441_v48 = vld [vmem:[%s1021_s3 + $0x10] sm:$0xff]  ;;  %v440_v51 = vld [vmem:[%s1021_s3 + $0x8] sm:$0xff]  ;;  %v439_v53 = vld [vmem:[%s1021_s3] sm:$0xff] }
 0x10e   : > { %v414_v31 = vld [vmem:[#allocation2] sm:$0xff]  ;;  %716 = vmatpush3.msra.mxu0 %v452_v29 }
 0x10f   : > { %717 = vmatprep.subr.mxu0 %v451_v30  ;;  %v423_v35 = vadd.f32 %v632_v34, %v414_v31  ;;  %v634_v39 = vmul.f32 -1.442695, %v424_v36  ;;  %v635_v58 = vld [vmem:[%s1022_s4] ss:$0 sm:$0xff] }
 0x110   : > { %718 = vmatpush3.msra.mxu0 %v451_v30 }
 0x111   : > { %719 = vmatprep.subr.mxu0 %v450_v33  ;;  %v633_v38 = vmul.f32 -1.442695, %v423_v35 }
 0x112   : > { %720 = vmatpush3.msra.mxu0 %v450_v33 }
 0x113   : > { %721 = vmatprep.subr.mxu0 %v449_v37  ;;  %787 = vpow2.f32 %v633_v38 }
 0x114   : > { %722 = vmatpush3.msra.mxu0 %v449_v37  ;;  %789 = vpow2.f32 %v634_v39 }
 0x115   : > { %723 = vmatprep.subr.mxu0 %v448_v40 }
 0x116   : > { %724 = vmatpush3.msra.mxu0 %v448_v40 }
 0x117   : > { %725 = vmatprep.subr.mxu0 %v447_v41 }
 0x118   : > { %726 = vmatpush3.msra.mxu0 %v447_v41 }
 0x119   : > { %727 = vmatprep.subr.mxu0 %v446_v42 }
 0x11a   : > { %728 = vmatpush3.msra.mxu0 %v446_v42 }
 0x11b   : > { %729 = vmatprep.subr.mxu0 %v445_v43 }
 0x11c   : > { %730 = vmatpush3.msra.mxu0 %v445_v43 }
 0x11d   : > { %731 = vmatprep.subr.mxu0 %v444_v44 }
 0x11e   : > { %732 = vmatpush3.msra.mxu0 %v444_v44 }
 0x11f   : > { %733 = vmatprep.subr.mxu0 %v443_v45 }
 0x120   : > { %v788_v47 = vpop.eup %787  ;;  %734 = vmatpush3.msra.mxu0 %v443_v45 }
 0x121   : > { %v790_v49 = vpop.eup %789  ;;  %735 = vmatprep.subr.mxu0 %v442_v46  ;;  %v431_v50 = vadd.f32 1.0, %v788_v47 }
 0x122   : > { %736 = vmatpush3.msra.mxu0 %v442_v46  ;;  %v432_v52 = vadd.f32 1.0, %v790_v49 }
 0x123   : > { %737 = vmatprep.subr.mxu0 %v441_v48  ;;  %791 = vrcp.f32 %v431_v50 }
 0x124   : > { %738 = vmatpush3.msra.mxu0 %v441_v48  ;;  %793 = vrcp.f32 %v432_v52 }
 0x125   : > { %739 = vmatprep.subr.mxu0 %v440_v51 }
 0x126   : > { %740 = vmatpush3.msra.mxu0 %v440_v51 }
 0x127   : > { %741 = vmatprep.subr.mxu0 %v439_v53 }
 0x128   : > { %742 = vmatpush3.msra.mxu0 %v439_v53 }
 0x130   : > { %v792_v54 = vpop.eup %791 }
 0x131   : > { %v794_v55 = vpop.eup %793  ;;  %v437_v56 = vmul.f32 %v792_v54, %v423_v35 }
 0x132   : > { %v438_v57 = vmul.f32 %v794_v55, %v424_v36 }
 0x133   : > { %743 = vmatprep.mubr.f32.mxu0 %v437_v56 }
 0x134   : > { %744 = vmatmul.mubr.f32.vlgmr.msra.gmra.mxu0 %v438_v57 }
 0x1f4   : > { %v745_v59 = vpop.f32.mrf.mxu0 }
 0x1f5   : > { %v534_v60 = vadd.f32 %v745_v59, %v635_v58 }
 0x1f6   : > { %v528_v61 = vpop.f32.mrf.mxu0 }
 0x1f7   : > { %538 = vst [vmem:[%s1023_s5 + $0x8] sm:$0xff] %v534_v60  ;;  %v529_v62 = vadd.f32 %v635_v58, %v528_v61 }
 0x1f9   : > { %537 = vst [vmem:[%s1023_s5] sm:$0xff] %v529_v62 }
 0x1fa PF: > { %s15_s22 = sadd.s32 1, %s833_s22   ;;  %s1024_s18 = smov %s821_s19 }
 0x1fb   : > { %p12_p12 = scmp.ge.s32.totalorder %s15_s22, 5   ;;  %s1025_s19 = smov %s901_s26 }
 0x1fc   : > { %s1026_s20 = smov %s829_s21  ;;  %s1027_s21 = smov %s1029_s23 }
 0x1fd   :  { %14 = sbr.rel (!%p12_p12) target bundleno = 3 (0x3), region = 124 }

</bundles_post_ra>
